<compile_context>
chip_gen: v7x
topology: tpu7x:2x2x1
jax: 0.10.0
libtpu: 0.0.40
codegen_flags: <defaults>
</compile_context>

<pallas_src>
import math

import jax
import jax.numpy as jnp
from jax.experimental import pallas as pl
from jax.experimental.pallas import tpu as pltpu

HIDDEN = 256
LANE = 128


def _round_up(x, m):
    return ((x + m - 1) // m) * m


def actor_kernel(z_ref, w1_ref, b1_ref, w2_ref, b2_ref, wh_ref, bh_ref,
                 out_ref):
    # 3 MXU matmuls, bf16 operands, f32 accumulation.  Bias+ReLU+downcast are
    # fused so only the bf16 intermediate is kept live between layers.
    h1 = jnp.maximum(
        jnp.dot(z_ref[...], w1_ref[...], preferred_element_type=jnp.float32)
        + b1_ref[...], 0.0).astype(w2_ref.dtype)
    h2 = jnp.maximum(
        jnp.dot(h1, w2_ref[...], preferred_element_type=jnp.float32)
        + b2_ref[...], 0.0).astype(wh_ref.dtype)
    # Fused, lane-padded head: cols [0, A) = mu, [A, 2A) = log_std, rest pad.
    # exp() for std is done in the wrapper on the tiny (B, A) slice only.
    out_ref[...] = (jnp.dot(h2, wh_ref[...],
                            preferred_element_type=jnp.float32) + bh_ref[...])


def _choose_tiling(B, tm_max=512):
    """Pick (tm, n_steps) minimizing pad rows while keeping >=2 grid steps
    for B >= 16 (so v7x's two TensorCores both get work) and tm <= tm_max
    (amortizes per-step overhead on v5e/v6e without blowing VMEM)."""
    if B >= 16:
        n_steps = max(pl.cdiv(B, tm_max), 2)
    else:
        n_steps = 1
    tm = _round_up(pl.cdiv(B, n_steps), 8)
    return tm, n_steps


def actor_forward(z, params, *, tm_max=512):
    """z: (B, latent_dim) float32.  Returns (mu, std) float32 of shape (B, A)."""
    B, latent_dim = z.shape
    action_dim = params["action_dim"]
    latent_pad = params["w1"].shape[0]
    head_pad = params["w_head"].shape[1]
    w_dtype = params["w1"].dtype

    tm, n_steps = _choose_tiling(B, tm_max)
    b_pad = tm * n_steps

    # Cast to bf16 once and zero-pad rows (batch) / cols (latent -> 128-lane).
    z_c = z.astype(w_dtype)
    z_c = jnp.pad(z_c, ((0, b_pad - B), (0, latent_pad - latent_dim)))

    # Weights/biases: constant index_map -> DMA'd once, VMEM-resident.
    resident = lambda a: pl.BlockSpec(a.shape, lambda i: (0,) * a.ndim)

    out = pl.pallas_call(
        actor_kernel,
        out_shape=jax.ShapeDtypeStruct((b_pad, head_pad), jnp.float32),
        grid=(n_steps,),
        in_specs=[
            pl.BlockSpec((tm, latent_pad), lambda i: (i, 0)),   # z rows tiled
            resident(params["w1"]), resident(params["b1"]),
            resident(params["w2"]), resident(params["b2"]),
            resident(params["w_head"]), resident(params["b_head"]),
        ],
        out_specs=pl.BlockSpec((tm, head_pad), lambda i: (i, 0)),
        compiler_params=pltpu.CompilerParams(
            dimension_semantics=("parallel",)),
    )(z_c, params["w1"], params["b1"], params["w2"], params["b2"],
      params["w_head"], params["b_head"])

    mu = out[:B, :action_dim]
    std = jnp.exp(out[:B, action_dim:2 * action_dim])
    return mu, std


def init_actor_params(key, latent_dim, action_dim, hidden=HIDDEN,
                      w_dtype=jnp.bfloat16):
    """PyTorch nn.Linear-style init (uniform +/- 1/sqrt(fan_in)).
    Weights stored pre-transposed as (in, out); W1's input dim zero-padded to
    a multiple of 128 lanes; the mu/log_std heads fused & zero-padded to a
    128-lane output.  Matmul weights cast to `w_dtype` (bf16), biases f32."""
    def linear(k, fan_in, fan_out):
        kw, kb = jax.random.split(k)
        bound = 1.0 / math.sqrt(fan_in)
        w = jax.random.uniform(kw, (fan_in, fan_out), jnp.float32, -bound, bound)
        b = jax.random.uniform(kb, (1, fan_out), jnp.float32, -bound, bound)
        return w, b

    k1, k2, k3, k4 = jax.random.split(key, 4)
    w1, b1 = linear(k1, latent_dim, hidden)
    w2, b2 = linear(k2, hidden, hidden)
    wmu, bmu = linear(k3, hidden, action_dim)
    wls, bls = linear(k4, hidden, action_dim)

    latent_pad = _round_up(max(latent_dim, LANE), LANE)
    w1p = jnp.zeros((latent_pad, hidden), jnp.float32).at[:latent_dim].set(w1)

    head_pad = _round_up(max(2 * action_dim, LANE), LANE)
    w_head = jnp.zeros((hidden, head_pad), jnp.float32)
    w_head = w_head.at[:, :action_dim].set(wmu)
    w_head = w_head.at[:, action_dim:2 * action_dim].set(wls)
    b_head = jnp.zeros((1, head_pad), jnp.float32)
    b_head = b_head.at[:, :action_dim].set(bmu)
    b_head = b_head.at[:, action_dim:2 * action_dim].set(bls)

    return dict(
        action_dim=action_dim,
        w1=w1p.astype(w_dtype), b1=b1,
        w2=w2.astype(w_dtype), b2=b2,
        w_head=w_head.astype(w_dtype), b_head=b_head,
    )


def actor_forward_ref(z, p):
    """Pure-JAX reference using the same bf16-rounded operands (f32 math)."""
    f32 = jnp.float32
    A = p["action_dim"]
    latent_pad = p["w1"].shape[0]
    zc = jnp.pad(z, ((0, 0), (0, latent_pad - z.shape[1])))
    zc = zc.astype(p["w1"].dtype).astype(f32)
    h1 = jnp.maximum(zc @ p["w1"].astype(f32) + p["b1"], 0.0)
    h2 = jnp.maximum(h1.astype(p["w2"].dtype).astype(f32) @ p["w2"].astype(f32)
                     + p["b2"], 0.0)
    head = (h2.astype(p["w_head"].dtype).astype(f32) @ p["w_head"].astype(f32)
            + p["b_head"])
    mu = head[:, :A]
    std = jnp.exp(head[:, A:2 * A])
    return mu, std


if __name__ == "__main__":
    latent_dim, action_dim, batch = 32, 4, 8
    key = jax.random.PRNGKey(0)
    kz, kp = jax.random.split(key)

    z = jax.random.normal(kz, (batch, latent_dim), jnp.float32)
    params = init_actor_params(kp, latent_dim, action_dim)

    mu, std = actor_forward(z, params)
    jax.block_until_ready((mu, std))

    mu_ref, std_ref = actor_forward_ref(z, params)
    assert mu.shape == (batch, action_dim) and std.shape == (batch, action_dim)
    assert jnp.allclose(mu, mu_ref, atol=1e-3, rtol=1e-3)
    assert jnp.allclose(std, std_ref, atol=1e-3, rtol=1e-3)
    assert bool(jnp.all(std > 0))

    # Also exercise a larger / awkward batch (multi-step grid, pad-row path).
    z_big = jax.random.normal(kz, (300, latent_dim), jnp.float32)
    mu_b, std_b = actor_forward(z_big, params)
    jax.block_until_ready((mu_b, std_b))
    mu_br, std_br = actor_forward_ref(z_big, params)
    assert jnp.allclose(mu_b, mu_br, atol=1e-3, rtol=1e-3)
    assert jnp.allclose(std_b, std_br, atol=1e-3, rtol=1e-3)

    # TODO(synk): Actor.sample() (tanh-squashed reparameterized sampling +
    # log_prob) is stochastic and not part of forward(); not implemented here.
    # TODO(synk): for per-env-step inference (B <= 64) the call is weight-DMA /
    # launch bound; keeping weights VMEM-resident across calls (P10) would be
    # the next lever but is outside a single-forward kernel.
    print("KERNEL_OK")
</pallas_src>

<mosaic_0001>
module attributes {stable_mosaic.version = 11 : i64} {
  func.func @actor_kernel(%arg0: i32, %arg1: memref<8x128xbf16, #tpu.memory_space<vmem>>, %arg2: memref<128x256xbf16, #tpu.memory_space<vmem>>, %arg3: memref<1x256xf32, #tpu.memory_space<vmem>>, %arg4: memref<256x256xbf16, #tpu.memory_space<vmem>>, %arg5: memref<1x256xf32, #tpu.memory_space<vmem>>, %arg6: memref<256x128xbf16, #tpu.memory_space<vmem>>, %arg7: memref<1x128xf32, #tpu.memory_space<vmem>>, %arg8: memref<8x128xf32, #tpu.memory_space<vmem>>) attributes {dimension_semantics = [#tpu.dimension_semantics<parallel>], iteration_bounds = array<i64: 1>, scalar_prefetch = 0 : i64, scratch_operands = 0 : i64, tpu.core_type = #tpu.core_type<tc>, window_params = [{transform_indices = @transform_0, window_bounds = array<i64: 8, 128>}, {pipeline_mode = #tpu.pipeline_mode<synchronous>, transform_indices = @transform_1, window_bounds = array<i64: 128, 256>}, {pipeline_mode = #tpu.pipeline_mode<synchronous>, transform_indices = @transform_2, window_bounds = array<i64: 1, 256>}, {pipeline_mode = #tpu.pipeline_mode<synchronous>, transform_indices = @transform_3, window_bounds = array<i64: 256, 256>}, {pipeline_mode = #tpu.pipeline_mode<synchronous>, transform_indices = @transform_4, window_bounds = array<i64: 1, 256>}, {pipeline_mode = #tpu.pipeline_mode<synchronous>, transform_indices = @transform_5, window_bounds = array<i64: 256, 128>}, {pipeline_mode = #tpu.pipeline_mode<synchronous>, transform_indices = @transform_6, window_bounds = array<i64: 1, 128>}, {transform_indices = @transform_7, window_bounds = array<i64: 8, 128>}]} {
    %c0 = arith.constant 0 : index
    %c0_0 = arith.constant 0 : index
    %0 = vector.load %arg1[%c0, %c0_0] : memref<8x128xbf16, #tpu.memory_space<vmem>>, vector<8x128xbf16>
    %c0_1 = arith.constant 0 : index
    %c0_2 = arith.constant 0 : index
    %1 = vector.load %arg2[%c0_1, %c0_2] : memref<128x256xbf16, #tpu.memory_space<vmem>>, vector<128x256xbf16>
    %cst = arith.constant dense<0.000000e+00> : vector<8x256xf32>
    %2 = tpu.matmul %0, %1, %cst {dimension_numbers = #tpu.dot_dimension_numbers<[1], [0], [0], [1], [0, 0, 1, 1], [], []>} : vector<8x128xbf16>, vector<128x256xbf16>, vector<8x256xf32> -> vector<8x256xf32>
    %c0_3 = arith.constant 0 : index
    %c0_4 = arith.constant 0 : index
    %3 = vector.load %arg3[%c0_3, %c0_4] : memref<1x256xf32, #tpu.memory_space<vmem>>, vector<1x256xf32>
    %4 = vector.broadcast %3 : vector<1x256xf32> to vector<8x256xf32>
    %5 = arith.addf %2, %4 : vector<8x256xf32>
    %cst_5 = arith.constant 0.000000e+00 : f32
    %6 = vector.broadcast %cst_5 : f32 to vector<8x256xf32>
    %7 = arith.maximumf %5, %6 : vector<8x256xf32>
    %8 = arith.truncf %7 : vector<8x256xf32> to vector<8x256xbf16>
    %c0_6 = arith.constant 0 : index
    %c0_7 = arith.constant 0 : index
    %9 = vector.load %arg4[%c0_6, %c0_7] : memref<256x256xbf16, #tpu.memory_space<vmem>>, vector<256x256xbf16>
    %cst_8 = arith.constant dense<0.000000e+00> : vector<8x256xf32>
    %10 = tpu.matmul %8, %9, %cst_8 {dimension_numbers = #tpu.dot_dimension_numbers<[1], [0], [0], [1], [0, 0, 1, 1], [], []>} : vector<8x256xbf16>, vector<256x256xbf16>, vector<8x256xf32> -> vector<8x256xf32>
    %c0_9 = arith.constant 0 : index
    %c0_10 = arith.constant 0 : index
    %11 = vector.load %arg5[%c0_9, %c0_10] : memref<1x256xf32, #tpu.memory_space<vmem>>, vector<1x256xf32>
    %12 = vector.broadcast %11 : vector<1x256xf32> to vector<8x256xf32>
    %13 = arith.addf %10, %12 : vector<8x256xf32>
    %cst_11 = arith.constant 0.000000e+00 : f32
    %14 = vector.broadcast %cst_11 : f32 to vector<8x256xf32>
    %15 = arith.maximumf %13, %14 : vector<8x256xf32>
    %16 = arith.truncf %15 : vector<8x256xf32> to vector<8x256xbf16>
    %c0_12 = arith.constant 0 : index
    %c0_13 = arith.constant 0 : index
    %17 = vector.load %arg6[%c0_12, %c0_13] : memref<256x128xbf16, #tpu.memory_space<vmem>>, vector<256x128xbf16>
    %cst_14 = arith.constant dense<0.000000e+00> : vector<8x128xf32>
    %18 = tpu.matmul %16, %17, %cst_14 {dimension_numbers = #tpu.dot_dimension_numbers<[1], [0], [0], [1], [0, 0, 1, 1], [], []>} : vector<8x256xbf16>, vector<256x128xbf16>, vector<8x128xf32> -> vector<8x128xf32>
    %c0_15 = arith.constant 0 : index
    %c0_16 = arith.constant 0 : index
    %19 = vector.load %arg7[%c0_15, %c0_16] : memref<1x128xf32, #tpu.memory_space<vmem>>, vector<1x128xf32>
    %20 = vector.broadcast %19 : vector<1x128xf32> to vector<8x128xf32>
    %21 = arith.addf %18, %20 : vector<8x128xf32>
    %c0_17 = arith.constant 0 : index
    %c0_18 = arith.constant 0 : index
    %22 = vector.load %arg8[%c0_17, %c0_18] : memref<8x128xf32, #tpu.memory_space<vmem>>, vector<8x128xf32>
    tpu.vector_store %arg8[%c0_17, %c0_18], %21 {strides = array<i32>} : memref<8x128xf32, #tpu.memory_space<vmem>>, vector<8x128xf32>,
    return
  }
  func.func @transform_0(%arg0: i32) -> (i32, i32) {
    %c0_i32 = arith.constant 0 : i32
    %c0_i32_0 = arith.constant 0 : i32
    return %arg0, %c0_i32 : i32, i32
  }
  func.func @transform_1(%arg0: i32) -> (i32, i32) {
    %c0_i32 = arith.constant 0 : i32
    %c0_i32_0 = arith.constant 0 : i32
    %c0_i32_1 = arith.constant 0 : i32
    return %c0_i32, %c0_i32_0 : i32, i32
  }
  func.func @transform_2(%arg0: i32) -> (i32, i32) {
    %c0_i32 = arith.constant 0 : i32
    %c0_i32_0 = arith.constant 0 : i32
    %c0_i32_1 = arith.constant 0 : i32
    return %c0_i32, %c0_i32_0 : i32, i32
  }
  func.func @transform_3(%arg0: i32) -> (i32, i32) {
    %c0_i32 = arith.constant 0 : i32
    %c0_i32_0 = arith.constant 0 : i32
    %c0_i32_1 = arith.constant 0 : i32
    return %c0_i32, %c0_i32_0 : i32, i32
  }
  func.func @transform_4(%arg0: i32) -> (i32, i32) {
    %c0_i32 = arith.constant 0 : i32
    %c0_i32_0 = arith.constant 0 : i32
    %c0_i32_1 = arith.constant 0 : i32
    return %c0_i32, %c0_i32_0 : i32, i32
  }
  func.func @transform_5(%arg0: i32) -> (i32, i32) {
    %c0_i32 = arith.constant 0 : i32
    %c0_i32_0 = arith.constant 0 : i32
    %c0_i32_1 = arith.constant 0 : i32
    return %c0_i32, %c0_i32_0 : i32, i32
  }
  func.func @transform_6(%arg0: i32) -> (i32, i32) {
    %c0_i32 = arith.constant 0 : i32
    %c0_i32_0 = arith.constant 0 : i32
    %c0_i32_1 = arith.constant 0 : i32
    return %c0_i32, %c0_i32_0 : i32, i32
  }
  func.func @transform_7(%arg0: i32) -> (i32, i32) {
    %c0_i32 = arith.constant 0 : i32
    %c0_i32_0 = arith.constant 0 : i32
    return %arg0, %c0_i32 : i32, i32
  }
}

</mosaic_0001>

<bundles_post_ra>
// kernel: tpu_custom_call.1
= control target key start
LH: loop header
LB: loop body
LE: loop exit
PB: predicated region body
PF: predicated region fallthrough
CT: control target
= control target key end

     0   :  { %12 = vsyncpa [#allocation3], 0  ;;  %s1105_s0 = inlined_call_operand.hbm [shape: bf16[8,128], index: 0, kind: input, shape index: {}]   ;;  %s1106_s1 = inlined_call_operand.hbm [shape: bf16[128,256], index: 1, kind: input, shape index: {}]   ;;  %s1107_s2 = inlined_call_operand.vmem [shape: f32[1,256], index: 2, kind: input, shape index: {}]   ;;  %s1108_s3 = inlined_call_operand.hbm [shape: bf16[256,256], index: 3, kind: input, shape index: {}]   ;;  %s1109_s4 = inlined_call_operand.vmem [shape: f32[1,256], index: 4, kind: input, shape index: {}]   ;;  %s1110_s5 = inlined_call_operand.hbm [shape: bf16[256,128], index: 5, kind: input, shape index: {}]   ;;  %s1111_s6 = inlined_call_operand.vmem [shape: f32[1,128], index: 6, kind: input, shape index: {}]   ;;  %s1112_s7 = inlined_call_operand.hbm [shape: f32[8,128], index: 7, kind: output, shape index: {}]  }
   0x1   :  { %13 = vsyncpa [#allocation6], 0 }
   0x2   :  { %14 = vsyncpa [#allocation9], 0 }
   0x3   :  { %15 = vsyncpa [#allocation4], 0  ;;  %s980_s24 = smov [#allocation5]   ;;  %s862_s28 = scalar_lea.hbm %s1106_s1, 2048 }
   0x4   :  { %s31_s25 = sshll.u32 %s980_s24, 4  ;;  %p863_p0 = scmp.ne.s32.totalorder %s1106_s1, %s862_s28  ;;  %s32_s25 = int_to_ptr.vmem [resolvable:$true] %s31_s25 }
   0x5   :  { %p866_p1 = scmp.lt.u32.totalorder %s862_s28, %s1106_s1 }
   0x7   :  { %p868_p2 = pnand %p866_p1, %p863_p0 }
   0x9   :  { %871 = shalt.err (!%p868_p2)
}
   0xa   :  { %s872_s10 = scalar_lea.vmem %s32_s25, 2048  ;;  %p877_p4 = scmp.lt.s32.totalorder %s32_s25, %s32_s25 }
   0xb   :  { %p873_p3 = scmp.ne.s32.totalorder %s32_s25, %s872_s10  ;;  %p878_p5 = scmp.lt.s32.totalorder %s872_s10, %s872_s10 }
   0xd   :  { %p879_p6 = por %p878_p5, %p877_p4 }
   0xf   :  { %p880_p7 = pnand %p879_p6, %p873_p3 }
  0x11   :  { %883 = shalt.err (!%p880_p7)
}
  0x12   :  { %s981_s11 = smov 128   ;;  %s982_s12 = smov 8  }
  0x13   :  { %37 = dma.hbm_to_vmem [thread:$0]  %s1106_s1, 2048, %s32_s25, [#allocation6], %s981_s11, %s981_s11, %s982_s12  }
  0x14   :  { %s983_s15 = smov [#allocation2]   ;;  %s984_s17 = smov [#allocation7]  }
  0x15   :  { %s22_s16 = sshll.u32 %s983_s15, 4  ;;  %s45_s18 = sshll.u32 %s984_s17, 4  ;;  %s23_s16 = int_to_ptr.vmem [resolvable:$true] %s22_s16  ;;  %s46_s18 = int_to_ptr.vmem [resolvable:$true] %s45_s18 }
  0x16   :  { %s884_s21 = scalar_lea.hbm %s1105_s0, 64 }
  0x17   :  { %p885_p8 = scmp.ne.s32.totalorder %s1105_s0, %s884_s21  ;;  %p888_p9 = scmp.lt.u32.totalorder %s884_s21, %s1105_s0 }
  0x19   :  { %p890_p10 = pnand %p888_p9, %p885_p8 }
  0x1b   :  { %893 = shalt.err (!%p890_p10)
}
  0x1c   :  { %s894_s1 = scalar_lea.vmem %s23_s16, 64  ;;  %p899_p12 = scmp.lt.s32.totalorder %s23_s16, %s23_s16 }
  0x1d   :  { %p895_p11 = scmp.ne.s32.totalorder %s23_s16, %s894_s1  ;;  %p900_p13 = scmp.lt.s32.totalorder %s894_s1, %s894_s1 }
  0x1f   :  { %p901_p0 = por %p900_p13, %p899_p12 }
  0x21   :  { %p902_p1 = pnand %p901_p0, %p895_p11 }
  0x23   :  { %905 = shalt.err (!%p902_p1)
}
  0x24   :  { %25 = dma.hbm_to_vmem [thread:$0]  %s1105_s0, 64, %s23_s16, [#allocation3]  }
  0x25   :  { %s906_s30 = scalar_lea.hbm %s1108_s3, 4096 }
  0x26   :  { %p907_p2 = scmp.ne.s32.totalorder %s1108_s3, %s906_s30  ;;  %p910_p3 = scmp.lt.u32.totalorder %s906_s30, %s1108_s3 }
  0x28   :  { %p912_p4 = pnand %p910_p3, %p907_p2 }
  0x2a   :  { %915 = shalt.err (!%p912_p4)
}
  0x2b   :  { %s916_s14 = scalar_lea.vmem %s46_s18, 4096  ;;  %p921_p6 = scmp.lt.s32.totalorder %s46_s18, %s46_s18 }
  0x2c   :  { %p917_p5 = scmp.ne.s32.totalorder %s46_s18, %s916_s14  ;;  %p922_p7 = scmp.lt.s32.totalorder %s916_s14, %s916_s14 }
  0x2e   :  { %p923_p8 = por %p922_p7, %p921_p6 }
  0x30   :  { %p924_p9 = pnand %p923_p8, %p917_p5 }
  0x32   :  { %927 = shalt.err (!%p924_p9)
}
  0x33   :  { %51 = dma.hbm_to_vmem [thread:$0]  %s1108_s3, 4096, %s46_s18, [#allocation6], %s981_s11, %s981_s11, %s982_s12  }
  0x34   :  { %s985_s16 = smov [#allocation8]   ;;  %s928_s21 = scalar_lea.hbm %s1110_s5, 2048 }
  0x35   :  { %s59_s17 = sshll.u32 %s985_s16, 4  ;;  %p929_p10 = scmp.ne.s32.totalorder %s1110_s5, %s928_s21  ;;  %s60_s17 = int_to_ptr.vmem [resolvable:$true] %s59_s17 }
  0x36   :  { %p932_p11 = scmp.lt.u32.totalorder %s928_s21, %s1110_s5 }
  0x38   :  { %p934_p12 = pnand %p932_p11, %p929_p10 }
  0x3a   :  { %937 = shalt.err (!%p934_p12)
}
  0x3b   :  { %s938_s1 = scalar_lea.vmem %s60_s17, 2048  ;;  %p943_p0 = scmp.lt.s32.totalorder %s60_s17, %s60_s17 }
  0x3c   :  { %p939_p13 = scmp.ne.s32.totalorder %s60_s17, %s938_s1  ;;  %p944_p1 = scmp.lt.s32.totalorder %s938_s1, %s938_s1 }
  0x3e   :  { %p945_p2 = por %p944_p1, %p943_p0 }
  0x40   :  { %p946_p3 = pnand %p945_p2, %p939_p13 }
  0x42   :  { %949 = shalt.err (!%p946_p3)
}
  0x43   :  { %s986_s3 = smov 64   ;;  %s987_s11 = smov 4  }
  0x44   :  { %65 = dma.hbm_to_vmem [thread:$0]  %s1110_s5, 2048, %s60_s17, [#allocation9], %s986_s3, %s986_s3, %s987_s11  }
  0x45   :  { %972 = dma.done.wait [#allocation3], 64  }
  0x46   :  { %973 = vsyncadd [#allocation3], 4294967232 }
  0x47   :  { %974 = dma.done.wait [#allocation6], 6144  }
  0x48   :  { %975 = vsyncadd [#allocation6], 4294961152 }
  0x49   :  { %976 = dma.done.wait [#allocation9], 2048  }
  0x4a   :  { %977 = vsyncadd [#allocation9], 4294965248  ;;  %v988_v0 = vmov 0   ;;  %v774_v1 = vld [vmem:[#allocation5 + $0x4] ss:$8 sps:$4 sm:$0xff]   ;;  %v850_v54 = vld [vmem:[#allocation8 + $0x50] sm:$0xff]   ;;  %v100_v62 = vlaneseq }
  0x4b   :  { %222 = vmatprep.mubr.bf16.mxu0 %v988_v0  ;;  %v776_v2 = vld [vmem:[#allocation5] ss:$8 sps:$4 sm:$0xff]   ;;  %190 = vmatprep.subr.bf16.mxu0 %v774_v1  ;;  %v777_v3 = vld [vmem:[#allocation5 + $0x14] ss:$8 sps:$4 sm:$0xff]   ;;  %v779_v4 = vld [vmem:[#allocation5 + $0x10] ss:$8 sps:$4 sm:$0xff]  }
  0x4c   :  { %191 = vmatpush1.bf16.msra.mxu0 %v776_v2  ;;  %v780_v5 = vld [vmem:[#allocation5 + $0x24] ss:$8 sps:$4 sm:$0xff]   ;;  %v782_v6 = vld [vmem:[#allocation5 + $0x20] ss:$8 sps:$4 sm:$0xff]   ;;  %v783_v7 = vld [vmem:[#allocation5 + $0x34] ss:$8 sps:$4 sm:$0xff]  }
  0x4d   :  { %192 = vmatprep.subr.bf16.mxu0 %v777_v3  ;;  %v785_v8 = vld [vmem:[#allocation5 + $0x30] ss:$8 sps:$4 sm:$0xff]   ;;  %v786_v9 = vld [vmem:[#allocation5 + $0x44] ss:$8 sps:$4 sm:$0xff]   ;;  %v800_v11 = vld [vmem:[#allocation7] ss:$8 sps:$4 sm:$0xff]  }
  0x4e   :  { %v798_v10 = vld [vmem:[#allocation7 + $0x4] ss:$8 sps:$4 sm:$0xff]   ;;  %v801_v12 = vld [vmem:[#allocation7 + $0x14] ss:$8 sps:$4 sm:$0xff]   ;;  %v788_v13 = vld [vmem:[#allocation5 + $0x40] ss:$8 sps:$4 sm:$0xff]  }
  0x4f   :  { %439 = vmatprep.subr.bf16.mxu1 %v798_v10  ;;  %v803_v14 = vld [vmem:[#allocation7 + $0x10] ss:$8 sps:$4 sm:$0xff]   ;;  %v804_v15 = vld [vmem:[#allocation7 + $0x24] ss:$8 sps:$4 sm:$0xff]   ;;  %v789_v16 = vld [vmem:[#allocation5 + $0x54] ss:$8 sps:$4 sm:$0xff]  }
  0x50   :  { %193 = vmatpush1.bf16.msra.mxu0 %v779_v4  ;;  %440 = vmatpush1.bf16.msra.mxu1 %v800_v11  ;;  %v791_v17 = vld [vmem:[#allocation5 + $0x50] ss:$8 sps:$4 sm:$0xff]   ;;  %v806_v18 = vld [vmem:[#allocation7 + $0x20] ss:$8 sps:$4 sm:$0xff]   ;;  %v807_v19 = vld [vmem:[#allocation7 + $0x34] ss:$8 sps:$4 sm:$0xff]  }
  0x51   :  { %194 = vmatprep.subr.bf16.mxu0 %v780_v5  ;;  %441 = vmatprep.subr.bf16.mxu1 %v801_v12  ;;  %v792_v20 = vld [vmem:[#allocation5 + $0x64] ss:$8 sps:$4 sm:$0xff]   ;;  %v794_v21 = vld [vmem:[#allocation5 + $0x60] ss:$8 sps:$4 sm:$0xff]   ;;  %v809_v22 = vld [vmem:[#allocation7 + $0x30] ss:$8 sps:$4 sm:$0xff]  }
  0x52   :  { %v810_v23 = vld [vmem:[#allocation7 + $0x44] ss:$8 sps:$4 sm:$0xff]   ;;  %v795_v24 = vld [vmem:[#allocation5 + $0x74] ss:$8 sps:$4 sm:$0xff]   ;;  %v797_v25 = vld [vmem:[#allocation5 + $0x70] ss:$8 sps:$4 sm:$0xff]  }
  0x53   :  { %v812_v26 = vld [vmem:[#allocation7 + $0x40] ss:$8 sps:$4 sm:$0xff]   ;;  %v813_v27 = vld [vmem:[#allocation7 + $0x54] ss:$8 sps:$4 sm:$0xff]   ;;  %v815_v29 = vld [vmem:[#allocation7 + $0x50] ss:$8 sps:$4 sm:$0xff]  }
  0x54   :  { %195 = vmatpush1.bf16.msra.mxu0 %v782_v6  ;;  %442 = vmatpush1.bf16.msra.mxu1 %v803_v14  ;;  %v81_v28 = vld [vmem:[#allocation2] sm:$0xf]  ;;  %v816_v30 = vld [vmem:[#allocation7 + $0x64] ss:$8 sps:$4 sm:$0xff]   ;;  %v818_v31 = vld [vmem:[#allocation7 + $0x60] ss:$8 sps:$4 sm:$0xff]  }
  0x55   :  { %196 = vmatprep.subr.bf16.mxu0 %v783_v7  ;;  %443 = vmatprep.subr.bf16.mxu1 %v804_v15  ;;  %v819_v32 = vld [vmem:[#allocation7 + $0x74] ss:$8 sps:$4 sm:$0xff]   ;;  %v821_v33 = vld [vmem:[#allocation7 + $0x70] ss:$8 sps:$4 sm:$0xff]   ;;  %v822_v34 = vld [vmem:[#allocation7 + $0x84] ss:$8 sps:$4 sm:$0xff]  }
  0x56   :  { %v824_v35 = vld [vmem:[#allocation7 + $0x80] ss:$8 sps:$4 sm:$0xff]   ;;  %v825_v36 = vld [vmem:[#allocation7 + $0x94] ss:$8 sps:$4 sm:$0xff]   ;;  %v827_v37 = vld [vmem:[#allocation7 + $0x90] ss:$8 sps:$4 sm:$0xff]  }
  0x57   :  { %v828_v38 = vld [vmem:[#allocation7 + $0xa4] ss:$8 sps:$4 sm:$0xff]   ;;  %v830_v39 = vld [vmem:[#allocation7 + $0xa0] ss:$8 sps:$4 sm:$0xff]   ;;  %v831_v40 = vld [vmem:[#allocation7 + $0xb4] ss:$8 sps:$4 sm:$0xff]  }
  0x58   :  { %197 = vmatpush1.bf16.msra.mxu0 %v785_v8  ;;  %444 = vmatpush1.bf16.msra.mxu1 %v806_v18  ;;  %v833_v41 = vld [vmem:[#allocation7 + $0xb0] ss:$8 sps:$4 sm:$0xff]   ;;  %v834_v42 = vld [vmem:[#allocation7 + $0xc4] ss:$8 sps:$4 sm:$0xff]   ;;  %v836_v43 = vld [vmem:[#allocation7 + $0xc0] ss:$8 sps:$4 sm:$0xff]  }
  0x59   :  { %198 = vmatprep.subr.bf16.mxu0 %v786_v9  ;;  %445 = vmatprep.subr.bf16.mxu1 %v807_v19  ;;  %v837_v44 = vld [vmem:[#allocation7 + $0xd4] ss:$8 sps:$4 sm:$0xff]   ;;  %v839_v45 = vld [vmem:[#allocation7 + $0xd0] ss:$8 sps:$4 sm:$0xff]   ;;  %v840_v46 = vld [vmem:[#allocation7 + $0xe4] ss:$8 sps:$4 sm:$0xff]  }
  0x5a   :  { %v842_v47 = vld [vmem:[#allocation7 + $0xe0] ss:$8 sps:$4 sm:$0xff]   ;;  %v843_v48 = vld [vmem:[#allocation7 + $0xf4] ss:$8 sps:$4 sm:$0xff]   ;;  %v845_v49 = vld [vmem:[#allocation7 + $0xf0] ss:$8 sps:$4 sm:$0xff]  }
  0x5b   :  { %v846_v50 = vld [vmem:[#allocation8 + $0x40] sm:$0xff]   ;;  %v848_v52 = vld [vmem:[#allocation8 + $0x48] sm:$0xff]   ;;  %v851_v55 = vld [vmem:[#allocation8 + $0x10] sm:$0xff]   ;;  %v101_v63 = vshrl.u32 %v100_v62, 7 }
  0x5c   :  { %199 = vmatpush1.bf16.msra.mxu0 %v788_v13  ;;  %446 = vmatpush1.bf16.msra.mxu1 %v809_v22  ;;  %v847_v51 = vld [vmem:[#allocation8] sm:$0xff]   ;;  %v849_v53 = vld [vmem:[#allocation8 + $0x8] sm:$0xff]   ;;  %v852_v56 = vld [vmem:[#allocation8 + $0x58] sm:$0xff]  }
  0x5d   :  { %200 = vmatprep.subr.bf16.mxu0 %v789_v16  ;;  %447 = vmatprep.subr.bf16.mxu1 %v810_v23  ;;  %v853_v57 = vld [vmem:[#allocation8 + $0x18] sm:$0xff]   ;;  %v854_v58 = vld [vmem:[#allocation8 + $0x60] sm:$0xff]   ;;  %v856_v60 = vld [vmem:[#allocation8 + $0x68] sm:$0xff]   ;;  %v102_v0 = vsub.s32 0, %v101_v63  ;;  %v106_v2 = vsub.s32 1, %v101_v63 }
  0x5e   :  { %v855_v59 = vld [vmem:[#allocation8 + $0x20] sm:$0xff]   ;;  %v857_v61 = vld [vmem:[#allocation8 + $0x28] sm:$0xff]   ;;  %v98_v1 = vld [vmem:[%s1107_s2] sm:$0x3] }
  0x5f   :  { %v103_v3 = vrot.slane %v98_v1, %v102_v0  ;;  %v107_v4 = vrot.slane %v98_v1, %v106_v2  ;;  %v858_v15 = vld [vmem:[#allocation8 + $0x70] sm:$0xff]   ;;  %v861_v18 = vld [vmem:[#allocation8 + $0x38] sm:$0xff]  }
  0x60   :  { %201 = vmatpush1.bf16.msra.mxu0 %v791_v17  ;;  %448 = vmatpush1.bf16.msra.mxu1 %v812_v26  ;;  %v859_v16 = vld [vmem:[#allocation8 + $0x30] sm:$0xff]   ;;  %v860_v17 = vld [vmem:[#allocation8 + $0x78] sm:$0xff]  }
  0x61   :  { %202 = vmatprep.subr.bf16.mxu0 %v792_v20  ;;  %449 = vmatprep.subr.bf16.mxu1 %v813_v27  ;;  %v267_v19 = vld [vmem:[%s1109_s4] sm:$0x3]  ;;  %s989_s4 = smov [#allocation10]  }
  0x62   :  { %v272_v20 = vrot.slane %v267_v19, %v102_v0  ;;  %s666_s30 = sshll.u32 %s989_s4, 4  ;;  %s667_s30 = int_to_ptr.vmem [resolvable:$true] %s666_s30 }
  0x63   :  { %s950_s8 = scalar_lea.vmem %s667_s30, 128  ;;  %p955_p5 = scmp.lt.s32.totalorder %s667_s30, %s667_s30 }
  0x64   :  { %203 = vmatpush1.bf16.msra.mxu0 %v794_v21  ;;  %450 = vmatpush1.bf16.msra.mxu1 %v815_v29  ;;  %v276_v21 = vrot.slane %v267_v19, %v106_v2  ;;  %p951_p4 = scmp.ne.s32.totalorder %s667_s30, %s950_s8  ;;  %p956_p6 = scmp.lt.s32.totalorder %s950_s8, %s950_s8 }
  0x65   :  { %204 = vmatprep.subr.bf16.mxu0 %v795_v24  ;;  %451 = vmatprep.subr.bf16.mxu1 %v816_v30 }
  0x66   :  { %p957_p7 = por %p956_p6, %p955_p5 }
  0x68   :  { %205 = vmatpush1.bf16.msra.mxu0 %v797_v25  ;;  %452 = vmatpush1.bf16.msra.mxu1 %v818_v31  ;;  %p958_p8 = pnand %p957_p7, %p951_p4 }
  0x69   :  { %453 = vmatprep.subr.bf16.mxu1 %v819_v32  ;;  %742 = vmatprep.subr.bf16.mxu0 %v846_v50 }
  0x6b   :  { %223 = vmatmul.mubr.bf16.vlgmr.msra.gmra.mrb[0].mxu0 %v81_v28 }
  0x6c   :  { %454 = vmatpush1.bf16.msra.mxu1 %v821_v33  ;;  %743 = vmatpush3.bf16.msra.mxu0 %v847_v51  ;;  %v725_v33 = vld [vmem:[%s1111_s6] ss:$0 sm:$0xff] }
  0x6d   :  { %455 = vmatprep.subr.bf16.mxu1 %v822_v34  ;;  %744 = vmatprep.subr.bf16.mxu0 %v848_v52 }
  0x70   :  { %456 = vmatpush1.bf16.msra.mxu1 %v824_v35  ;;  %745 = vmatpush3.bf16.msra.mxu0 %v849_v53 }
  0x71   :  { %457 = vmatprep.subr.bf16.mxu1 %v825_v36  ;;  %746 = vmatprep.subr.bf16.mxu0 %v850_v54 }
  0x74   :  { %458 = vmatpush1.bf16.msra.mxu1 %v827_v37  ;;  %747 = vmatpush3.bf16.msra.mxu0 %v851_v55 }
  0x75   :  { %459 = vmatprep.subr.bf16.mxu1 %v828_v38  ;;  %748 = vmatprep.subr.bf16.mxu0 %v852_v56 }
  0x78   :  { %460 = vmatpush1.bf16.msra.mxu1 %v830_v39  ;;  %749 = vmatpush3.bf16.msra.mxu0 %v853_v57 }
  0x79   :  { %461 = vmatprep.subr.bf16.mxu1 %v831_v40  ;;  %750 = vmatprep.subr.bf16.mxu0 %v854_v58 }
  0x7c   :  { %462 = vmatpush1.bf16.msra.mxu1 %v833_v41  ;;  %751 = vmatpush3.bf16.msra.mxu0 %v855_v59 }
  0x7d   :  { %463 = vmatprep.subr.bf16.mxu1 %v834_v42  ;;  %752 = vmatprep.subr.bf16.mxu0 %v856_v60 }
  0x80   :  { %464 = vmatpush1.bf16.msra.mxu1 %v836_v43  ;;  %753 = vmatpush3.bf16.msra.mxu0 %v857_v61 }
  0x81   :  { %465 = vmatprep.subr.bf16.mxu1 %v837_v44  ;;  %754 = vmatprep.subr.bf16.mxu0 %v858_v15 }
  0x84   :  { %466 = vmatpush1.bf16.msra.mxu1 %v839_v45  ;;  %755 = vmatpush3.bf16.msra.mxu0 %v859_v16 }
  0x85   :  { %467 = vmatprep.subr.bf16.mxu1 %v840_v46  ;;  %756 = vmatprep.subr.bf16.mxu0 %v860_v17 }
  0x88   :  { %468 = vmatpush1.bf16.msra.mxu1 %v842_v47  ;;  %757 = vmatpush3.bf16.msra.mxu0 %v861_v18 }
  0x89   :  { %469 = vmatprep.subr.bf16.mxu1 %v843_v48 }
  0x8c   :  { %470 = vmatpush1.bf16.msra.mxu1 %v845_v49 }
 0x13e   :  { %v224_v5 = vpop.f32.mrb[0].mxu0 }
 0x13f   :  { %v225_v6 = vadd.f32 %v224_v5, %v103_v3  ;;  %v226_v7 = vpop.f32.mrb[1].mxu0 }
 0x140   :  { %v227_v8 = vadd.f32 %v226_v7, %v107_v4  ;;  %v228_v9 = vpop.f32.mrb[2].mxu0 }
 0x141   :  { %v231_v10 = vmax.f32 %v225_v6, 0.0  ;;  %v229_v11 = vpop.f32.mrb[3].mxu0 }
 0x142   :  { %v232_v12 = vmax.f32 %v227_v8, 0.0 }
 0x143   :  { %v233_v14 = vpack.c.bf16 %v231_v10, %v231_v10 }
 0x144   :  { %v234_v13 = vpack.c.bf16 %v232_v12, %v232_v12 }
 0x146   :  { %471 = vmatprep.mubr.bf16.mxu1 %v234_v13 }
 0x147   :  { %472 = vmatmul.mubr.bf16.vlgmr.msra.gmra.mrb[0].mxu1 %v233_v14 }
 0x21a   :  { %v473_v22 = vpop.f32.mrb[0].mxu1 }
 0x21b   :  { %v474_v23 = vadd.f32 %v473_v22, %v272_v20  ;;  %v475_v24 = vpop.f32.mrb[1].mxu1 }
 0x21c   :  { %v476_v25 = vadd.f32 %v475_v24, %v276_v21  ;;  %v477_v26 = vpop.f32.mrb[2].mxu1 }
 0x21d   :  { %v480_v27 = vmax.f32 %v474_v23, 0.0  ;;  %v478_v28 = vpop.f32.mrb[3].mxu1 }
 0x21e   :  { %v481_v29 = vmax.f32 %v476_v25, 0.0 }
 0x21f   :  { %v482_v31 = vpack.c.bf16 %v480_v27, %v480_v27 }
 0x220   :  { %v483_v30 = vpack.c.bf16 %v481_v29, %v481_v29 }
 0x222   :  { %651 = vmatprep.mubr.bf16.mxu0 %v483_v30 }
 0x223   :  { %652 = vmatmul.mubr.bf16.vlgmr.msra.gmra.mrb[4].mxu0 %v482_v31 }
 0x2f6   :  { %v758_v32 = vpop.f32.mrb[4].mxu0 }
 0x2f7   :  { %v759_v34 = vpop.f32.mrb[5].mxu0 }
 0x2f8   :  { %v760_v35 = vadd.f32 %v759_v34, %v758_v32  ;;  %v761_v36 = vpop.f32.mrb[6].mxu0 }
 0x2f9   :  { %v762_v37 = vpop.f32.mrb[7].mxu0 }
 0x2fa   :  { %v654_v38 = vadd.f32 %v760_v35, %v725_v33 }
 0x2fc   :  { %659 = vst [vmem:[#allocation10] sm:$0xff] %v654_v38 }
 0x2fd   :  { %961 = shalt.err (!%p958_p8)
}
 0x2fe   :  { %s962_s6 = scalar_lea.hbm %s1112_s7, 128 }
 0x2ff   :  { %p963_p9 = scmp.ne.s32.totalorder %s1112_s7, %s962_s6  ;;  %p966_p10 = scmp.lt.u32.totalorder %s962_s6, %s1112_s7 }
 0x301   :  { %p968_p11 = pnand %p966_p10, %p963_p9 }
 0x303   :  { %971 = shalt.err (!%p968_p11)
}
 0x304   :  { %669 = dma.vmem_to_hbm [thread:$0]  %s667_s30, 128, %s1112_s7, [#allocation4]  }
 0x305   :  { %978 = dma.done.wait [#allocation4], 128  }
 0x306   :  { %979 = vsyncadd [#allocation4], 4294967168 }
 0x307   :  { %673 = vsyncpa [#allocation3], 1 }
 0x308   :  { %674 = vsyncpa [#allocation6], 1 }
 0x309   :  { %675 = vsyncpa [#allocation9], 1 }
 0x30a   :  { %676 = vsyncpa [#allocation4], 1 }

</bundles_post_ra>
